<compile_context>
chip_gen: v5e
topology: v5e:2x2
jax: 0.10.0
libtpu: 0.0.40
codegen_flags: <defaults>
</compile_context>

<pallas_src>
import functools

import jax
import jax.numpy as jnp
from jax.experimental import pallas as pl
from jax.experimental.pallas import tpu as pltpu

_VMEM_LIMIT = 48 * 1024 * 1024  # safe on v5e/v6e (128 MiB phys) and v7x (64 MiB phys)


# --------------------------------------------------------------------------------------
# Pass 1: per-channel sum / sumsq, strip-tiled reduction over the pixel axis.
# --------------------------------------------------------------------------------------
def _gn_stats_kernel(x_ref, stat_ref):
    x = x_ref[0].astype(jnp.float32)                       # (C, TH*W)
    part = jnp.concatenate(
        [jnp.sum(x, axis=1, keepdims=True),
         jnp.sum(x * x, axis=1, keepdims=True)], axis=1)   # (C, 2)

    @pl.when(pl.program_id(1) == 0)
    def _():
        stat_ref[0] = jnp.zeros_like(stat_ref[0])

    stat_ref[0] += part


# --------------------------------------------------------------------------------------
# Pass 2: per-channel affine (folded GroupNorm) + SiLU + fused 9-tap conv on a row strip.
# --------------------------------------------------------------------------------------
def _unet_out_kernel(xh_ref, scale_ref, shift_ref, w_ref, b_ref, o_ref, *, H, W, TH, CP):
    THW = TH * W
    s = pl.program_id(1)
    row0 = s * TH

    x = xh_ref[0, 0].astype(jnp.float32)                   # (C, MW) haloed strip
    MW = x.shape[1]                                        # padded window width (mult of 128)

    # GroupNorm folded into per-channel scale/shift (computed from the stats pass).
    xn = x * scale_ref[0] + shift_ref[0]                   # (C, MW), f32
    # SiLU; the reciprocal goes to the EUP (approx) and co-issues with the VALU work.
    # TODO(synk): on v6e/v7x this chain could run in bf16 ([16,128] vregs) for ~2x VALU/EUP.
    y = xn * pl.reciprocal(1.0 + jnp.exp(-xn), approx=True)

    # Fused 3x3 conv: one bf16 matmul over all nine taps, f32 accumulate.
    z = jnp.dot(w_ref[...], y.astype(jnp.bfloat16),
                preferred_element_type=jnp.float32)        # (9*CP, MW)

    # Output-pixel row/col indices within this strip (computed once per grid step).
    q = jax.lax.broadcasted_iota(jnp.int32, (1, THW), 1)
    r = q // W
    c = q - r * W
    h = r + row0                                           # global row index

    def tap(t):
        dy, dx = t // 3 - 1, t % 3 - 1
        off = (1 + dy) * W + dx                            # window offset of this tap
        z_t = z[t * CP:(t + 1) * CP, :]                    # sublane-aligned slab (CP, MW)
        if off % MW == 0:
            rolled = z_t[:, :THW]
        else:
            # rolled[p] = z_t[(p + off) % MW]; every wrap / halo-garbage read is masked below.
            rolled = pltpu.roll(z_t, (-off) % MW, axis=1)[:, :THW]
        return dy, dx, rolled

    # Centre tap is always valid -> it initializes the accumulator (no zeros pass).
    _, _, acc = tap(4)
    for t in (0, 1, 2, 3, 5, 6, 7, 8):
        dy, dx, rolled = tap(t)
        conds = []
        if dy == -1:
            conds.append(h >= 1)
        elif dy == 1:
            conds.append(h <= H - 2)
        if dx == -1:
            conds.append(c >= 1)
        elif dx == 1:
            conds.append(c <= W - 2)
        mask = functools.reduce(jnp.logical_and, conds)    # (1, THW)
        acc = acc + jnp.where(mask, rolled, 0.0)

    o_ref[0] = (acc + b_ref[...]).astype(o_ref.dtype)      # lane-dense (CP, TH*W) store


def _pick_strip_rows(H, W, target_lanes=2048):
    """Largest-enough divisor of H whose strip is lane-tileable ((th*W) % 128 == 0)."""
    N = H * W
    target = min(target_lanes, max(128, N // 2))
    valid = sorted(th for th in range(1, H + 1)
                   if H % th == 0 and ((th * W) % 128 == 0 or th == H))
    for th in valid:
        if th * W >= target:
            return th
    return H


def unet_output_layer(x_nchw, gamma, beta, weight, bias, *, groups=32, eps=1e-5):
    """x_nchw: (B, C, H, W); weight: (COUT, C, 3, 3); bias: (COUT,) -- PyTorch conventions."""
    B, C, H, W = x_nchw.shape
    COUT = weight.shape[0]
    assert C % groups == 0
    cg = C // groups
    N = H * W
    CP = max(8, ((COUT + 7) // 8) * 8)           # pad out-channels to a full sublane tile

    TH = _pick_strip_rows(H, W)                  # output rows per strip
    S = H // TH
    THW = TH * W
    MH = (TH + 2) * W                            # haloed window width
    MW = ((MH + 127) // 128) * 128               # padded to a lane-tile multiple

    # ---------------- pass 1: strip-tiled per-channel sum / sumsq ----------------
    x_flat = x_nchw.reshape(B, C, N)
    stats = pl.pallas_call(
        _gn_stats_kernel,
        out_shape=jax.ShapeDtypeStruct((B, C, 2), jnp.float32),
        grid_spec=pltpu.PrefetchScalarGridSpec(
            num_scalar_prefetch=0,
            grid=(B, S),
            in_specs=[pl.BlockSpec((1, C, THW), lambda b, s: (b, 0, s))],
            out_specs=pl.BlockSpec((1, C, 2), lambda b, s: (b, 0, 0)),
        ),
        compiler_params=pltpu.CompilerParams(
            dimension_semantics=("parallel", "arbitrary"),
            vmem_limit_bytes=_VMEM_LIMIT),
    )(x_flat)

    # Tiny O(B*C) math: group pooling + fold (mean, inv_std, gamma, beta) into scale/shift.
    st = stats.reshape(B, groups, cg, 2).sum(axis=2)                    # (B, G, 2)
    denom = float(N * cg)
    mean_g = st[..., 0] / denom
    var_g = jnp.maximum(st[..., 1] / denom - mean_g * mean_g, 0.0)
    inv_g = jax.lax.rsqrt(var_g + eps)
    mean_c = jnp.repeat(mean_g, cg, axis=1)                             # (B, C)
    inv_c = jnp.repeat(inv_g, cg, axis=1)
    scale_c = inv_c * gamma[None, :].astype(jnp.float32)
    shift_c = beta[None, :].astype(jnp.float32) - mean_c * scale_c
    scale = scale_c.reshape(B, C, 1)
    shift = shift_c.reshape(B, C, 1)

    # Haloed row strips (B, S, C, MW): +-1 row per strip; image-edge halos are zero rows
    # (their dy taps are masked in-kernel, so the pad value is irrelevant).
    # TODO(synk): a manual-DMA (memory_space=pl.ANY) halo fetch would avoid materializing
    # this (TH+2)/TH-sized copy of x in HBM; kept as BlockSpec auto-pipelining for robustness.
    xp = jnp.pad(x_nchw, ((0, 0), (0, 0), (1, 1), (0, 0)))
    row_idx = jnp.arange(S)[:, None] * TH + jnp.arange(TH + 2)[None, :]  # (S, TH+2)
    x_halo = xp[:, :, row_idx, :]                                        # (B, C, S, TH+2, W)
    x_halo = jnp.transpose(x_halo, (0, 2, 1, 3, 4)).reshape(B, S, C, MH)
    if MW != MH:
        x_halo = jnp.pad(x_halo, ((0, 0), (0, 0), (0, 0), (0, MW - MH)))

    # Fused 3x3 weights -> (9*CP, C) bf16 and padded bias.
    # TODO(synk): in a real module these transforms would be precomputed once at init.
    wt = jnp.transpose(weight, (2, 3, 0, 1)).reshape(9, COUT, C)
    wt = jnp.pad(wt, ((0, 0), (0, CP - COUT), (0, 0)))
    wf = wt.reshape(9 * CP, C).astype(jnp.bfloat16)
    bias_p = jnp.pad(bias.astype(jnp.float32), (0, CP - COUT)).reshape(CP, 1)

    kernel = functools.partial(_unet_out_kernel, H=H, W=W, TH=TH, CP=CP)
    out_pad = pl.pallas_call(
        kernel,
        out_shape=jax.ShapeDtypeStruct((B, CP, N), x_nchw.dtype),
        grid_spec=pltpu.PrefetchScalarGridSpec(
            num_scalar_prefetch=0,
            grid=(B, S),
            in_specs=[
                pl.BlockSpec((1, 1, C, MW), lambda b, s: (b, s, 0, 0)),
                pl.BlockSpec((1, C, 1), lambda b, s: (b, 0, 0)),
                pl.BlockSpec((1, C, 1), lambda b, s: (b, 0, 0)),
                pl.BlockSpec((9 * CP, C), lambda b, s: (0, 0)),
                pl.BlockSpec((CP, 1), lambda b, s: (0, 0)),
            ],
            out_specs=pl.BlockSpec((1, CP, THW), lambda b, s: (b, 0, s)),
        ),
        compiler_params=pltpu.CompilerParams(
            dimension_semantics=("parallel", "parallel"),   # batch AND strips -> v7x dual-TC
            vmem_limit_bytes=_VMEM_LIMIT),
    )(x_halo, scale, shift, wf, bias_p)

    return out_pad[:, :COUT, :].reshape(B, COUT, H, W)


def _reference(x, gamma, beta, weight, bias, groups=32, eps=1e-5):
    B, C, H, W = x.shape
    xg = x.reshape(B, groups, C // groups, H, W)
    mean = xg.mean(axis=(2, 3, 4), keepdims=True)
    var = xg.var(axis=(2, 3, 4), keepdims=True)
    xn = ((xg - mean) / jnp.sqrt(var + eps)).reshape(B, C, H, W)
    xn = xn * gamma[None, :, None, None] + beta[None, :, None, None]
    y = xn * jax.nn.sigmoid(xn)
    out = jax.lax.conv_general_dilated(
        y, weight, window_strides=(1, 1), padding="SAME",
        dimension_numbers=("NCHW", "OIHW", "NCHW"))
    return out + bias[None, :, None, None]


if __name__ == "__main__":
    B, C_IN, C_OUT, H, W = 2, 64, 4, 16, 16   # C_IN divisible by 32 (GroupNorm groups)

    key = jax.random.PRNGKey(0)
    kx, kg, kb, kw, kbias = jax.random.split(key, 5)
    x = jax.random.normal(kx, (B, C_IN, H, W), jnp.float32)
    gamma = 1.0 + 0.1 * jax.random.normal(kg, (C_IN,), jnp.float32)           # GroupNorm weight
    beta = 0.1 * jax.random.normal(kb, (C_IN,), jnp.float32)                  # GroupNorm bias
    w_std = 1.0 / (C_IN * 9) ** 0.5
    weight = w_std * jax.random.normal(kw, (C_OUT, C_IN, 3, 3), jnp.float32)  # Conv2d weight
    bias = 0.05 * jax.random.normal(kbias, (C_OUT,), jnp.float32)             # Conv2d bias

    out = unet_output_layer(x, gamma, beta, weight, bias)
    out = jax.block_until_ready(out)
    assert out.shape == (B, C_OUT, H, W), out.shape

    ref = jax.block_until_ready(_reference(x, gamma, beta, weight, bias))
    assert jnp.allclose(out, ref, rtol=2e-2, atol=2e-2), float(jnp.max(jnp.abs(out - ref)))

    print("KERNEL_OK")
</pallas_src>

<mosaic_0001>
module attributes {stable_mosaic.version = 11 : i64} {
  func.func @_gn_stats_kernel(%arg0: i32, %arg1: i32, %arg2: memref<1x64x128xf32, #tpu.memory_space<vmem>>, %arg3: memref<1x64x2xf32, #tpu.memory_space<vmem>>) attributes {dimension_semantics = [#tpu.dimension_semantics<parallel>, #tpu.dimension_semantics<arbitrary>], iteration_bounds = array<i64: 2, 2>, scalar_prefetch = 0 : i64, scratch_operands = 0 : i64, tpu.core_type = #tpu.core_type<tc>, window_params = [{transform_indices = @transform_0, window_bounds = array<i64: 1, 64, 128>}, {transform_indices = @transform_1, window_bounds = array<i64: 1, 64, 2>}]} {
    %c0 = arith.constant 0 : index
    %c0_0 = arith.constant 0 : index
    %c0_1 = arith.constant 0 : index
    %0 = vector.load %arg2[%c0, %c0_0, %c0_1] : memref<1x64x128xf32, #tpu.memory_space<vmem>>, vector<1x64x128xf32>
    %1 = vector.shape_cast %0 : vector<1x64x128xf32> to vector<64x128xf32>
    %cst = arith.constant dense<0.000000e+00> : vector<64xf32>
    %2 = vector.multi_reduction <add>, %1, %cst [1] : vector<64x128xf32> to vector<64xf32>
    %3 = vector.shape_cast %2 : vector<64xf32> to vector<64x1xf32>
    %4 = arith.mulf %1, %1 : vector<64x128xf32>
    %cst_2 = arith.constant dense<0.000000e+00> : vector<64xf32>
    %5 = vector.multi_reduction <add>, %4, %cst_2 [1] : vector<64x128xf32> to vector<64xf32>
    %6 = vector.shape_cast %5 : vector<64xf32> to vector<64x1xf32>
    %7 = tpu.concatenate %3, %6 in 1 : vector<64x1xf32>, vector<64x1xf32> -> vector<64x2xf32>
    %c0_i32 = arith.constant 0 : i32
    %8 = arith.cmpi eq, %arg1, %c0_i32 : i32
    %9 = arith.extui %8 : i1 to i32
    %c0_i32_3 = arith.constant 0 : i32
    %10 = arith.cmpi ne, %9, %c0_i32_3 : i32
    scf.if %10 {
      %cst_10 = arith.constant 0.000000e+00 : f32
      %17 = vector.broadcast %cst_10 : f32 to vector<64x2xf32>
      %c0_11 = arith.constant 0 : index
      %c0_12 = arith.constant 0 : index
      %c0_13 = arith.constant 0 : index
      %18 = vector.load %arg3[%c0_11, %c0_12, %c0_13] : memref<1x64x2xf32, #tpu.memory_space<vmem>>, vector<1x64x2xf32>
      %19 = vector.shape_cast %18 : vector<1x64x2xf32> to vector<64x2xf32>
      %20 = vector.shape_cast %17 : vector<64x2xf32> to vector<1x64x2xf32>
      tpu.vector_store %arg3[%c0_11, %c0_12, %c0_13], %20 {strides = array<i32>} : memref<1x64x2xf32, #tpu.memory_space<vmem>>, vector<1x64x2xf32>,
    } else {
    }
    %c0_4 = arith.constant 0 : index
    %c0_5 = arith.constant 0 : index
    %c0_6 = arith.constant 0 : index
    %11 = vector.load %arg3[%c0_4, %c0_5, %c0_6] : memref<1x64x2xf32, #tpu.memory_space<vmem>>, vector<1x64x2xf32>
    %12 = vector.shape_cast %11 : vector<1x64x2xf32> to vector<64x2xf32>
    %13 = arith.addf %12, %7 : vector<64x2xf32>
    %c0_7 = arith.constant 0 : index
    %c0_8 = arith.constant 0 : index
    %c0_9 = arith.constant 0 : index
    %14 = vector.load %arg3[%c0_7, %c0_8, %c0_9] : memref<1x64x2xf32, #tpu.memory_space<vmem>>, vector<1x64x2xf32>
    %15 = vector.shape_cast %14 : vector<1x64x2xf32> to vector<64x2xf32>
    %16 = vector.shape_cast %13 : vector<64x2xf32> to vector<1x64x2xf32>
    tpu.vector_store %arg3[%c0_7, %c0_8, %c0_9], %16 {strides = array<i32>} : memref<1x64x2xf32, #tpu.memory_space<vmem>>, vector<1x64x2xf32>,
    return
  }
  func.func @transform_0(%arg0: i32, %arg1: i32) -> (i32, i32, i32) {
    %c0_i32 = arith.constant 0 : i32
    %c0_i32_0 = arith.constant 0 : i32
    return %arg0, %c0_i32, %arg1 : i32, i32, i32
  }
  func.func @transform_1(%arg0: i32, %arg1: i32) -> (i32, i32, i32) {
    %c0_i32 = arith.constant 0 : i32
    %c0_i32_0 = arith.constant 0 : i32
    %c0_i32_1 = arith.constant 0 : i32
    return %arg0, %c0_i32, %c0_i32_0 : i32, i32, i32
  }
}

</mosaic_0001>

<bundles_post_ra>
// kernel: tpu_custom_call.1
= control target key start
LH: loop header
LB: loop body
LE: loop exit
PB: predicated region body
PF: predicated region fallthrough
CT: control target
= control target key end

     0   :  { %6 = vsyncpa [#allocation3], 0  ;;  %s687_s0 = inlined_call_operand.hbm [shape: f32[2,64,256], index: 0, kind: input, shape index: {}]   ;;  %s688_s1 = inlined_call_operand.vmem [shape: f32[2,64,2], index: 1, kind: output, shape index: {}]  }
   0x1   :  { %8 = vsyncpa [#allocation3 + $0x1], 0  ;;  %s531_s6 = smov 0   ;;  %s533_s7 = smov 0  }
   0x2   :  { %s535_s8 = smov 0   ;;  %s537_s9 = smov 0  }
   0x3   :  { %s539_s10 = smov 0   ;;  %s541_s11 = smov 0  }
   0x4   :  { %s543_s12 = smov 0   ;;  %s545_s13 = smov 0  }
   0x5 LB: > { %s329_s14 = sadd.s32 4294967295, %s515_s13   ;;  %s23_s15 = sadd.s32 1, %s507_s11  ;;  %s515_s13 = sphi %s545_s13, %s14_s13   ;;  %s511_s12 = sphi %s543_s12, %s697_s12   ;;  %s507_s11 = sphi %s541_s11, %s696_s11   ;;  %s503_s10 = sphi %s539_s10, %s695_s10   ;;  %s499_s9 = sphi %s537_s9, %s694_s9   ;;  %s495_s8 = sphi %s535_s8, %s693_s8   ;;  %s491_s7 = sphi %s533_s7, %s692_s7   ;;  %s487_s6 = sphi %s531_s6, %s691_s6  }
   0x6   : > { %p24_p0 = scmp.ge.s32.totalorder %s23_s15, 2  ;;  %s26_s16 = sadd.s32 1, %s511_s12 }
   0x7   : > { %s35_s17 = sadd.s32 1, %s495_s8  ;;  %p42_p1 = scmp.ne.s32.totalorder %s495_s8, %s491_s7 }
   0x8   : > { %s699_s15 = smov (%p24_p0, %s23_s15), 0  ;;  %s701_s16 = smov (!%p24_p0, %s26_s16), %s511_s12 }
   0x9   : > { %s31_s18 = ssub.s32 %s507_s11, %s699_s15  ;;  %p43_p2 = scmp.eq.s32.totalorder %s515_s13, 0 }
   0xa   : > { %p28_p3 = scmp.ge.s32.totalorder %s701_s16, 2  ;;  %p48_p4 = scmp.ne.s32.totalorder %s491_s7, %s487_s6 }
   0xb   : > { %p582_p5 = por %p43_p2, %p42_p1  ;;  %p49_p6 = scmp.eq.s32.totalorder %s329_s14, 0 }
   0xc   : > { %s703_s16 = smov (%p28_p3, %s701_s16), 0  ;;  %p350_p8 = scmp.lt.s32.totalorder %s515_s13, 4 }
   0xd   : > { %p588_p7 = por %p49_p6, %p48_p4  ;;  %s30_s21 = ssub.s32 %s511_s12, %s703_s16 }
   0xe   : > { %s32_s22 = sor.u32 %s31_s18, %s30_s21  ;;  %s98_s23 = sand.u32 1, %s495_s8  }
   0xf   : > { %p33_p9 = scmp.eq.s32.totalorder %s32_s22, 0  ;;  %s333_s24 = sshll.u32 %s98_s23, 6 }
  0x10   : > { %s334_s25 = sshll.u32 %s511_s12, 4  ;;  %s102_s29 = scalar_lea.vmem [#allocation2], %s333_s24 }
  0x11   : > { %s598_s26 = scalar_select %p33_p9, %s495_s8, %s35_s17  }
  0x12   : > { %s106_s27 = sadd.s32 %s507_s11, %s334_s25  ;;  %s111_s30 = sshll.u32 %s102_s29, 4  ;;  %s112_s30 = int_to_ptr.vmem [resolvable:$true] %s111_s30 }
  0x13   : > { %s335_s28 = sshll.u32 %s106_s27, 3  ;;  %p347_p10 = pnand %p350_p8, %p582_p5 }
  0x14   : > { %s108_s4 = scalar_lea.hbm %s687_s0, %s335_s28  ;;  %p336_p11 = scmp.ge.s32.totalorder %s515_s13, 1 }
  0x15   : > { %s109_s5 = sshll.u32 %s108_s4, 4  ;;  %s99_s6 = scalar_lea.sflag [#allocation3], %s98_s23  ;;  %s110_s5 = int_to_ptr.hbm [resolvable:$true] %s109_s5 }
  0x16   : > { %s517_s14 = smov 256   ;;  %s518_s17 = smov 128  }
  0x17   : > { %s519_s18 = smov 8   ;;  %p119_p12 = scmp.lt.s32.totalorder %s515_s13, 5 }
  0x18   : > { %349 = dma.hbm_to_vmem [thread:$0]  (!%p347_p10), %s110_s5, 1024, %s112_s30, %s99_s6, %s517_s14, %s518_s17, %s519_s18  }
  0x19   : > { %p120_p13 = pnand %p336_p11, %p119_p12 }
  0x1a   : > { %s125_s21 = sand.u32 (!%p120_p13), 1, %s491_s7  }
  0x1b   : > { %123 = sbr.rel (%p120_p13) target bundleno = 212 (0xd4), region = 24  ;;  %s337_s22 = sshll.u32 (!%p120_p13), %s125_s21, 6 }
  0x1c   : > { %s126_s24 = scalar_lea.sflag (!%p120_p13), [#allocation3], %s125_s21  ;;  %s129_s25 = scalar_lea.vmem (!%p120_p13), [#allocation2], %s337_s22 }
  0x20   : > { %482 = dma.done.wait (%p588_p7), %s126_s24, 1024  }
  0x21   : > { %484 = vsyncadd (%p588_p7), %s126_s24, 4294966272  ;;  %v158_v0 = vld [vmem:[%s129_s25 + $0x20] sm:$0xff]  ;;  %v156_v1 = vld [vmem:[%s129_s25 + $0x10] sm:$0xff]  ;;  %p149_p0 = scmp.lt.s32.totalorder %s503_s10, 1  ;;  %vm202_vm0 = vcmask 7168   ;;  %p340_p1 = scmp.ne.s32.totalorder %s499_s9, 0 }
  0x22   : > { %v154_v2 = vld [vmem:[%s129_s25] sm:$0xff]  ;;  %170 = vadd.xlane.f32.xlu2 %v158_v0  ;;  %166 = vadd.xlane.f32.xlu1 %v156_v1  ;;  %v159_v3 = vld [vmem:[%s129_s25 + $0x28] sm:$0xff]  ;;  %v157_v4 = vld [vmem:[%s129_s25 + $0x18] sm:$0xff]  ;;  %v180_v9 = vmul.f32 %v156_v1, %v156_v1  ;;  %v182_v14 = vmul.f32 %v158_v0, %v158_v0 }
  0x23   : > { %162 = vadd.xlane.f32.xlu0 %v154_v2  ;;  %v155_v5 = vld [vmem:[%s129_s25 + $0x8] sm:$0xff]  ;;  %v178_v6 = vmul.f32 %v154_v2, %v154_v2  ;;  %v161_v7 = vld [vmem:[%s129_s25 + $0x38] sm:$0xff]  ;;  %v160_v8 = vld [vmem:[%s129_s25 + $0x30] sm:$0xff]  ;;  %v181_v10 = vmul.f32 %v157_v4, %v157_v4  ;;  %s705_s10 = smov (!%p149_p0, %s503_s10), 1  ;;  %v183_v12 = vmul.f32 %v159_v3, %v159_v3 }
  0x24   : > { %v179_v11 = vmul.f32 %v155_v5, %v155_v5  ;;  %v184_v13 = vmul.f32 %v160_v8, %v160_v8  ;;  %s343_s19 = sshll.u32 %s705_s10, 6  ;;  %v185_v15 = vmul.f32 %v161_v7, %v161_v7 }
  0x25   : > { %s620_s27 = scalar_lea.vmem %s688_s1, %s343_s19 }
  0x2a   : > { %172 = vadd.xlane.f32.xlu2 %v159_v3  ;;  %168 = vadd.xlane.f32.xlu1 %v157_v4 }
  0x2b   : > { %164 = vadd.xlane.f32.xlu0 %v155_v5 }
  0x32   : > { %176 = vadd.xlane.f32.xlu1 %v161_v7  ;;  %186 = vadd.xlane.f32.xlu2 %v178_v6 }
  0x33   : > { %174 = vadd.xlane.f32.xlu0 %v160_v8 }
  0x3a   : > { %190 = vadd.xlane.f32.xlu1 %v180_v9  ;;  %192 = vadd.xlane.f32.xlu2 %v181_v10 }
  0x3b   : > { %188 = vadd.xlane.f32.xlu0 %v179_v11 }
  0x42   : > { %196 = vadd.xlane.f32.xlu1 %v183_v12  ;;  %198 = vadd.xlane.f32.xlu2 %v184_v13 }
  0x43   : > { %194 = vadd.xlane.f32.xlu0 %v182_v14 }
  0x4b   : > { %200 = vadd.xlane.f32.xlu0 %v185_v15 }
  0x95   : > { %v171_v16 = vpop.xlane.xlu2 %170  ;;  %v167_v17 = vpop.xlane.xlu1 %166 }
  0x96   : > { %v163_v18 = vpop.xlane.xlu0 %162 }
  0x9d   : > { %v173_v19 = vpop.xlane.xlu2 %172  ;;  %v169_v20 = vpop.xlane.xlu1 %168 }
  0x9e   : > { %v165_v21 = vpop.xlane.xlu0 %164 }
  0xa5   : > { %v177_v22 = vpop.xlane.xlu1 %176  ;;  %v187_v23 = vpop.xlane.xlu2 %186 }
  0xa6   : > { %v175_v24 = vpop.xlane.xlu0 %174  ;;  %v203_v25 = vsel %vm202_vm0, %v163_v18, %v187_v23 }
  0xad   : > { %v191_v26 = vpop.xlane.xlu1 %190  ;;  %v193_v27 = vpop.xlane.xlu2 %192 }
  0xae   : > { %v205_v28 = vsel %vm202_vm0, %v167_v17, %v191_v26  ;;  %v189_v29 = vpop.xlane.xlu0 %188  ;;  %v206_v30 = vsel %vm202_vm0, %v169_v20, %v193_v27 }
  0xaf   : > { %v204_v31 = vsel %vm202_vm0, %v165_v21, %v189_v29 }
  0xb5   : > { %v197_v32 = vpop.xlane.xlu1 %196  ;;  %v199_v33 = vpop.xlane.xlu2 %198 }
  0xb6   : > { %v208_v34 = vsel %vm202_vm0, %v173_v19, %v197_v32  ;;  %v195_v35 = vpop.xlane.xlu0 %194  ;;  %v209_v36 = vsel %vm202_vm0, %v175_v24, %v199_v33 }
  0xb7   : > { %v207_v37 = vsel %vm202_vm0, %v171_v16, %v195_v35 }
  0xbb   : > { %214 = sbr.rel (%p340_p1) target bundleno = 201 (0xc9), region = 32 }
  0xbe   : > { %v201_v38 = vpop.xlane.xlu0 %200 }
  0xbf   : > { %v210_v39 = vsel %vm202_vm0, %v177_v22, %v201_v38 }
  0xc0   : > { %vm215_vm1 = vcmask 15360   ;;  %v520_v40 = vmov 0.0  }
  0xc1   : > { %216 = vst.msk [vmem:[%s620_s27] sm:$0xff] %vm215_vm1, %v520_v40 }
  0xc2   : > { %217 = vst.msk [vmem:[%s620_s27 + $0x8] sm:$0xff] %vm215_vm1, %v520_v40 }
  0xc3   : > { %218 = vst.msk [vmem:[%s620_s27 + $0x10] sm:$0xff] %vm215_vm1, %v520_v40 }
  0xc4   : > { %219 = vst.msk [vmem:[%s620_s27 + $0x18] sm:$0xff] %vm215_vm1, %v520_v40 }
  0xc5   : > { %220 = vst.msk [vmem:[%s620_s27 + $0x20] sm:$0xff] %vm215_vm1, %v520_v40 }
  0xc6   : > { %221 = vst.msk [vmem:[%s620_s27 + $0x28] sm:$0xff] %vm215_vm1, %v520_v40 }
  0xc7   : > { %222 = vst.msk [vmem:[%s620_s27 + $0x30] sm:$0xff] %vm215_vm1, %v520_v40 }
  0xc8   : > { %223 = vst.msk [vmem:[%s620_s27 + $0x38] sm:$0xff] %vm215_vm1, %v520_v40 }
  0xc9 PF: > { %v224_v41 = vld [vmem:[%s620_s27] sm:$0xff]  ;;  %vm240_vm2 = vcmask 15360   ;;  %v225_v42 = vld [vmem:[%s620_s27 + $0x8] sm:$0xff] }
  0xca   : > { %v226_v43 = vld [vmem:[%s620_s27 + $0x10] sm:$0xff]  ;;  %v232_v44 = vadd.f32 %v224_v41, %v203_v25  ;;  %v233_v45 = vadd.f32 %v225_v42, %v204_v31 }
  0xcb   : > { %v234_v46 = vadd.f32 %v226_v43, %v205_v28  ;;  %v227_v47 = vld [vmem:[%s620_s27 + $0x18] sm:$0xff] }
  0xcc   : > { %v228_v48 = vld [vmem:[%s620_s27 + $0x20] sm:$0xff]  ;;  %v235_v50 = vadd.f32 %v227_v47, %v206_v30  ;;  %241 = vst.msk [vmem:[%s620_s27] sm:$0xff] %vm240_vm2, %v232_v44 }
  0xcd   : > { %v229_v49 = vld [vmem:[%s620_s27 + $0x28] sm:$0xff]  ;;  %v236_v52 = vadd.f32 %v228_v48, %v207_v37  ;;  %242 = vst.msk [vmem:[%s620_s27 + $0x8] sm:$0xff] %vm240_vm2, %v233_v45 }
  0xce   : > { %v230_v51 = vld [vmem:[%s620_s27 + $0x30] sm:$0xff]  ;;  %v237_v54 = vadd.f32 %v229_v49, %v208_v34  ;;  %243 = vst.msk [vmem:[%s620_s27 + $0x10] sm:$0xff] %vm240_vm2, %v234_v46 }
  0xcf   : > { %v231_v53 = vld [vmem:[%s620_s27 + $0x38] sm:$0xff]  ;;  %v238_v55 = vadd.f32 %v230_v51, %v209_v36  ;;  %244 = vst.msk [vmem:[%s620_s27 + $0x18] sm:$0xff] %vm240_vm2, %v235_v50 }
  0xd0   : > { %v239_v56 = vadd.f32 %v231_v53, %v210_v39  ;;  %245 = vst.msk [vmem:[%s620_s27 + $0x20] sm:$0xff] %vm240_vm2, %v236_v52 }
  0xd1   : > { %246 = vst.msk [vmem:[%s620_s27 + $0x28] sm:$0xff] %vm240_vm2, %v237_v54 }
  0xd2   : > { %247 = vst.msk [vmem:[%s620_s27 + $0x30] sm:$0xff] %vm240_vm2, %v238_v55 }
  0xd3   : > { %248 = vst.msk [vmem:[%s620_s27 + $0x38] sm:$0xff] %vm240_vm2, %v239_v56 }
  0xd4 PF: > { %s14_s13 = sadd.s32 1, %s515_s13   ;;  %s691_s6 = smov %s491_s7 }
  0xd5   : > { %p11_p2 = scmp.ge.s32.totalorder %s14_s13, 6   ;;  %s692_s7 = smov %s495_s8 }
  0xd6   : > { %s693_s8 = smov %s598_s26  ;;  %s694_s9 = smov %s507_s11 }
  0xd7   : > { %s695_s10 = smov %s511_s12  ;;  %s696_s11 = smov %s699_s15 }
  0xd8   : > { %s697_s12 = smov %s703_s16  ;;  %13 = sbr.rel (!%p11_p2) target bundleno = 5 (0x5), region = 68 }
  0xdd   :  { %270 = vsyncpa [#allocation3], 1 }
  0xde   :  { %272 = vsyncpa [#allocation3 + $0x1], 1 }

</bundles_post_ra>
